<compile_context>
chip_gen: v7x
topology: tpu7x:2x2x1
jax: 0.10.0
libtpu: 0.0.40
codegen_flags: <defaults>
</compile_context>

<pallas_src>
import functools
import math

import jax
import jax.numpy as jnp
import numpy as np
from jax.experimental import pallas as pl
from jax.experimental.pallas import tpu as pltpu


def _xpos_kernel(a_ref, b_ref, c_ref, d_ref, sin_ref, cos_ref, scale_ref, *, block_rows):
    """Lane-dense kernel: out refs are (block_rows, W) tiles; a/b/c/d are (1, W) lane tables.

    For flat element f = global_row*W + lane (pos = f // D, col = f % D, both baked into tables):
        sinusoid(f)  = pos * inv_freq[col]                           = row * A[lane] + B[lane]
        scale_arg(f) = (pos - len//2)/scale_base * log(scale_buf[col]) = row * C[lane] + D[lane]
    """
    row = (jax.lax.broadcasted_iota(jnp.int32, sin_ref.shape, 0)
           + pl.program_id(0) * block_rows).astype(jnp.float32)
    sinusoid = row * a_ref[...] + b_ref[...]
    sin_ref[...] = jnp.sin(sinusoid).astype(sin_ref.dtype)
    cos_ref[...] = jnp.cos(sinusoid).astype(cos_ref.dtype)
    scale_ref[...] = jnp.exp(row * c_ref[...] + d_ref[...]).astype(scale_ref.dtype)


def xpos_forward(head_dim, length, scale_base=512, *, out_dtype=jnp.float32,
                 max_block_rows=4096, target_block_bytes=2 * 1024 * 1024):
    """Pallas implementation of XPos(head_dim, scale_base).forward(length).

    Returns (sin, cos, scale), each (length, head_dim//2) in `out_dtype` (f32 default, bf16 opt).
    """
    assert head_dim >= 2 and head_dim % 2 == 0, "head_dim must be even (>= 2)"
    assert length >= 1
    D = head_dim // 2
    W = (128 * D) // math.gcd(D, 128)          # lcm(D, 128): lane width of the flat slab
    per_row = W // D                            # positions per slab row (a power of two)
    rows = -(-length // per_row)                # cdiv(length, per_row)
    half = length // 2
    inv_scale_base = 1.0 / float(scale_base)

    # ---- (1, W) lane tables: built once, host-side, tiny. scale_buf in (0,1] so log is finite.
    col = np.arange(W) % D                                   # f %  D per lane
    q = (np.arange(W) // D).astype(np.float64)               # f // D offset per lane
    inv_freq = 1.0 / 10000.0 ** (col / D)
    log_scale = np.log((2.0 * col + 0.4 * head_dim) / (1.4 * head_dim))
    A = per_row * inv_freq
    B = q * inv_freq
    C = per_row * inv_scale_base * log_scale
    Dt = (q - half) * inv_scale_base * log_scale
    tables = [jnp.asarray(t.reshape(1, W), dtype=jnp.float32) for t in (A, B, C, Dt)]

    # ---- block sizing: ~target bytes per output block; >= 2 grid steps when rows allow it,
    #      so v7x can shard the grid across its 2 TensorCores.
    if rows <= 8:
        br = rows                                            # equals full array dim -> legal
    else:
        br = min(max_block_rows, max(8, target_block_bytes // (W * 4)))
        br = max(8, (br // 8) * 8)                           # sublane multiple of 8
        br = min(br, (((rows + 1) // 2 + 7) // 8) * 8)       # force >= 2 grid steps
    grid = (pl.cdiv(rows, br),)

    out_sds = jax.ShapeDtypeStruct((rows, W), out_dtype)
    n_out = rows * W
    cost = pl.CostEstimate(
        flops=4 * n_out,
        transcendentals=3 * n_out,
        bytes_accessed=3 * n_out * np.dtype(out_dtype).itemsize,
    )

    sin2, cos2, scale2 = pl.pallas_call(
        functools.partial(_xpos_kernel, block_rows=br),
        out_shape=(out_sds, out_sds, out_sds),
        grid=grid,
        in_specs=[pl.BlockSpec((1, W), lambda i: (0, 0))] * 4,
        out_specs=(pl.BlockSpec((br, W), lambda i: (i, 0)),) * 3,
        compiler_params=pltpu.CompilerParams(
            dimension_semantics=("parallel",),
            vmem_limit_bytes=32 * 1024 * 1024),
        cost_estimate=cost,
    )(*tables)

    def unflatten(a):
        if rows * per_row == length:
            return a.reshape(length, D)          # free row-major reshape, no copy
        # length not a multiple of per_row: one leading-axis slice is the only remaining copy;
        # the sliced-off tail rows contain finite garbage for positions >= length.
        return a.reshape(rows * per_row, D)[:length]

    return unflatten(sin2), unflatten(cos2), unflatten(scale2)


def xpos_forward_ref(head_dim, length, scale_base):
    """Pure-JAX reference mirroring the PyTorch module."""
    D = head_dim // 2
    scale_buf = (jnp.arange(0, head_dim, 2, dtype=jnp.float32) + 0.4 * head_dim) / (1.4 * head_dim)
    pos = jnp.arange(length, dtype=jnp.float32)
    exponent = (pos - (length // 2)) / scale_base
    scale = scale_buf[None, :] ** exponent[:, None]
    inv_freq = 1.0 / 10000.0 ** (jnp.arange(D, dtype=jnp.float32) / D)
    sinusoid = pos[:, None] * inv_freq[None, :]
    return jnp.sin(sinusoid), jnp.cos(sinusoid), scale


if __name__ == "__main__":
    _ = jax.random.PRNGKey(0)   # module has no learned weights / tensor inputs (deterministic)

    def check(head_dim, seq_len, scale_base, out_dtype, tol):
        D = head_dim // 2
        sin, cos, scale = xpos_forward(head_dim, seq_len, scale_base, out_dtype=out_dtype)
        jax.block_until_ready((sin, cos, scale))
        sin_r, cos_r, scale_r = xpos_forward_ref(head_dim, seq_len, scale_base)
        assert sin.shape == (seq_len, D)
        assert cos.shape == (seq_len, D)
        assert scale.shape == (seq_len, D)
        assert sin.dtype == out_dtype
        for got, ref in ((sin, sin_r), (cos, cos_r), (scale, scale_r)):
            assert jnp.allclose(got.astype(jnp.float32), ref, atol=tol, rtol=tol), \
                (head_dim, seq_len, out_dtype)

    # Spec-sized case: head_dim=32, seq=8 (D=16 divides 128 -> single slab row).
    check(head_dim=32, seq_len=8, scale_base=512, out_dtype=jnp.float32, tol=2e-5)
    # Multi-step grid (rows=128 -> 2 parallel blocks; pipelined writeback / 2-TC shardable).
    check(head_dim=64, seq_len=512, scale_base=512, out_dtype=jnp.float32, tol=1e-3)
    # head_dim whose D does not divide 128 (D=12 -> W=lcm(12,128)=384 lane-dense slab).
    check(head_dim=24, seq_len=10, scale_base=512, out_dtype=jnp.float32, tol=2e-5)
    # length not a multiple of positions-per-row -> exercises the tail-slice branch.
    check(head_dim=64, seq_len=10, scale_base=512, out_dtype=jnp.float32, tol=2e-5)
    # bf16 store variant (halves written bytes on the HBM-writeback-bound path).
    check(head_dim=32, seq_len=128, scale_base=512, out_dtype=jnp.bfloat16, tol=3e-2)

    print("KERNEL_OK")
</pallas_src>

<mosaic_0001>
module attributes {stable_mosaic.version = 11 : i64} {
  func.func @_xpos_kernel(%arg0: i32, %arg1: memref<1x128xf32, #tpu.memory_space<vmem>>, %arg2: memref<1x128xf32, #tpu.memory_space<vmem>>, %arg3: memref<1x128xf32, #tpu.memory_space<vmem>>, %arg4: memref<1x128xf32, #tpu.memory_space<vmem>>, %arg5: memref<1x128xf32, #tpu.memory_space<vmem>>, %arg6: memref<1x128xf32, #tpu.memory_space<vmem>>, %arg7: memref<1x128xf32, #tpu.memory_space<vmem>>) attributes {dimension_semantics = [#tpu.dimension_semantics<parallel>], iteration_bounds = array<i64: 1>, scalar_prefetch = 0 : i64, scratch_operands = 0 : i64, tpu.core_type = #tpu.core_type<tc>, window_params = [{pipeline_mode = #tpu.pipeline_mode<synchronous>, transform_indices = @transform_0, window_bounds = array<i64: 1, 128>}, {pipeline_mode = #tpu.pipeline_mode<synchronous>, transform_indices = @transform_1, window_bounds = array<i64: 1, 128>}, {pipeline_mode = #tpu.pipeline_mode<synchronous>, transform_indices = @transform_2, window_bounds = array<i64: 1, 128>}, {pipeline_mode = #tpu.pipeline_mode<synchronous>, transform_indices = @transform_3, window_bounds = array<i64: 1, 128>}, {transform_indices = @transform_4, window_bounds = array<i64: 1, 128>}, {transform_indices = @transform_5, window_bounds = array<i64: 1, 128>}, {transform_indices = @transform_6, window_bounds = array<i64: 1, 128>}]} {
    %0 = tpu.iota {dimensions = array<i32: 0>} : vector<1x128xi32>
    %c1_i32 = arith.constant 1 : i32
    %1 = arith.muli %arg0, %c1_i32 : i32
    %2 = vector.broadcast %1 : i32 to vector<1x128xi32>
    %3 = arith.addi %0, %2 : vector<1x128xi32>
    %4 = arith.sitofp %3 : vector<1x128xi32> to vector<1x128xf32>
    %c0 = arith.constant 0 : index
    %c0_0 = arith.constant 0 : index
    %5 = vector.load %arg1[%c0, %c0_0] : memref<1x128xf32, #tpu.memory_space<vmem>>, vector<1x128xf32>
    %6 = arith.mulf %4, %5 : vector<1x128xf32>
    %c0_1 = arith.constant 0 : index
    %c0_2 = arith.constant 0 : index
    %7 = vector.load %arg2[%c0_1, %c0_2] : memref<1x128xf32, #tpu.memory_space<vmem>>, vector<1x128xf32>
    %8 = arith.addf %6, %7 : vector<1x128xf32>
    %9 = math.sin %8 : vector<1x128xf32>
    %c0_3 = arith.constant 0 : index
    %c0_4 = arith.constant 0 : index
    %10 = vector.load %arg5[%c0_3, %c0_4] : memref<1x128xf32, #tpu.memory_space<vmem>>, vector<1x128xf32>
    tpu.vector_store %arg5[%c0_3, %c0_4], %9 {strides = array<i32>} : memref<1x128xf32, #tpu.memory_space<vmem>>, vector<1x128xf32>,
    %11 = math.cos %8 : vector<1x128xf32>
    %c0_5 = arith.constant 0 : index
    %c0_6 = arith.constant 0 : index
    %12 = vector.load %arg6[%c0_5, %c0_6] : memref<1x128xf32, #tpu.memory_space<vmem>>, vector<1x128xf32>
    tpu.vector_store %arg6[%c0_5, %c0_6], %11 {strides = array<i32>} : memref<1x128xf32, #tpu.memory_space<vmem>>, vector<1x128xf32>,
    %c0_7 = arith.constant 0 : index
    %c0_8 = arith.constant 0 : index
    %13 = vector.load %arg3[%c0_7, %c0_8] : memref<1x128xf32, #tpu.memory_space<vmem>>, vector<1x128xf32>
    %14 = arith.mulf %4, %13 : vector<1x128xf32>
    %c0_9 = arith.constant 0 : index
    %c0_10 = arith.constant 0 : index
    %15 = vector.load %arg4[%c0_9, %c0_10] : memref<1x128xf32, #tpu.memory_space<vmem>>, vector<1x128xf32>
    %16 = arith.addf %14, %15 : vector<1x128xf32>
    %17 = math.exp %16 : vector<1x128xf32>
    %c0_11 = arith.constant 0 : index
    %c0_12 = arith.constant 0 : index
    %18 = vector.load %arg7[%c0_11, %c0_12] : memref<1x128xf32, #tpu.memory_space<vmem>>, vector<1x128xf32>
    tpu.vector_store %arg7[%c0_11, %c0_12], %17 {strides = array<i32>} : memref<1x128xf32, #tpu.memory_space<vmem>>, vector<1x128xf32>,
    return
  }
  func.func @transform_0(%arg0: i32) -> (i32, i32) {
    %c0_i32 = arith.constant 0 : i32
    %c0_i32_0 = arith.constant 0 : i32
    %c0_i32_1 = arith.constant 0 : i32
    return %c0_i32, %c0_i32_0 : i32, i32
  }
  func.func @transform_1(%arg0: i32) -> (i32, i32) {
    %c0_i32 = arith.constant 0 : i32
    %c0_i32_0 = arith.constant 0 : i32
    %c0_i32_1 = arith.constant 0 : i32
    return %c0_i32, %c0_i32_0 : i32, i32
  }
  func.func @transform_2(%arg0: i32) -> (i32, i32) {
    %c0_i32 = arith.constant 0 : i32
    %c0_i32_0 = arith.constant 0 : i32
    %c0_i32_1 = arith.constant 0 : i32
    return %c0_i32, %c0_i32_0 : i32, i32
  }
  func.func @transform_3(%arg0: i32) -> (i32, i32) {
    %c0_i32 = arith.constant 0 : i32
    %c0_i32_0 = arith.constant 0 : i32
    %c0_i32_1 = arith.constant 0 : i32
    return %c0_i32, %c0_i32_0 : i32, i32
  }
  func.func @transform_4(%arg0: i32) -> (i32, i32) {
    %c0_i32 = arith.constant 0 : i32
    %c0_i32_0 = arith.constant 0 : i32
    return %arg0, %c0_i32 : i32, i32
  }
  func.func @transform_5(%arg0: i32) -> (i32, i32) {
    %c0_i32 = arith.constant 0 : i32
    %c0_i32_0 = arith.constant 0 : i32
    return %arg0, %c0_i32 : i32, i32
  }
  func.func @transform_6(%arg0: i32) -> (i32, i32) {
    %c0_i32 = arith.constant 0 : i32
    %c0_i32_0 = arith.constant 0 : i32
    return %arg0, %c0_i32 : i32, i32
  }
}

</mosaic_0001>

<bundles_post_ra>
// kernel: tpu_custom_call.1
= control target key start
LH: loop header
LB: loop body
LE: loop exit
PB: predicated region body
PF: predicated region fallthrough
CT: control target
= control target key end

     0   :  { %12 = vsyncpa [#allocation3], 0  ;;  %s562_s0 = inlined_call_operand.hbm [shape: f32[1,128], index: 0, kind: input, shape index: {}]   ;;  %s563_s1 = inlined_call_operand.vmem [shape: f32[1,128], index: 1, kind: input, shape index: {}]   ;;  %s564_s2 = inlined_call_operand.vmem [shape: f32[1,128], index: 2, kind: input, shape index: {}]   ;;  %s565_s3 = inlined_call_operand.vmem [shape: f32[1,128], index: 3, kind: input, shape index: {}]   ;;  %s566_s4 = inlined_call_operand.hbm [shape: f32[1,128], index: 4, kind: output, shape index: {0}]   ;;  %s567_s5 = inlined_call_operand.hbm [shape: f32[1,128], index: 5, kind: output, shape index: {1}]   ;;  %s568_s6 = inlined_call_operand.hbm [shape: f32[1,128], index: 6, kind: output, shape index: {2}]  }
   0x1   :  { %13 = vsyncpa [#allocation4], 0 }
   0x2   :  { %14 = vsyncpa [#allocation7], 0  ;;  %s423_s21 = smov [#allocation2]   ;;  %s329_s25 = scalar_lea.hbm %s562_s0, 16 }
   0x3   :  { %s21_s22 = sshll.u32 %s423_s21, 4  ;;  %p330_p0 = scmp.ne.s32.totalorder %s562_s0, %s329_s25  ;;  %s22_s22 = int_to_ptr.vmem [resolvable:$true] %s21_s22 }
   0x4   :  { %p333_p1 = scmp.lt.u32.totalorder %s329_s25, %s562_s0 }
   0x6   :  { %p335_p2 = pnand %p333_p1, %p330_p0 }
   0x8   :  { %338 = shalt.err (!%p335_p2)
}
   0x9   :  { %s339_s30 = scalar_lea.vmem %s22_s22, 16  ;;  %s343_s7 = scalar_lea.vmem %s22_s22, 32 }
   0xa   :  { %p340_p3 = scmp.ne.s32.totalorder %s22_s22, %s339_s30  ;;  %p344_p4 = scmp.lt.s32.totalorder %s22_s22, %s22_s22 }
   0xb   :  { %p345_p5 = scmp.lt.s32.totalorder %s343_s7, %s339_s30 }
   0xd   :  { %p346_p6 = por %p345_p5, %p344_p4 }
   0xf   :  { %p347_p7 = pnand %p346_p6, %p340_p3 }
  0x11   :  { %350 = shalt.err (!%p347_p7)
}
  0x12   :  { %24 = dma.hbm_to_vmem [thread:$0]  %s562_s0, 16, %s22_s22, [#allocation3]  }
  0x13   :  { %417 = dma.done.wait [#allocation3], 16  }
  0x14   :  { %418 = vsyncadd [#allocation3], 4294967280  ;;  %v34_v0 = vlaneseq  ;;  %v39_v3 = vld [vmem:[#allocation2] sm:$0x1]  ;;  %v424_v23 = vmov 683565275  }
  0x15   :  { %v41_v4 = vld [vmem:[%s563_s1] sm:$0x1]  ;;  %v425_v25 = vmov 2475754826   ;;  %v426_v27 = vmov 2131351028  }
  0x16   :  { %v35_v1 = vshrl.u32 %v34_v0, 7  ;;  %v252_v5 = vld [vmem:[%s564_s2] sm:$0x1]  ;;  %v427_v30 = vmov 2102212464   ;;  %s430_s0 = smov [#allocation6]  }
  0x17   :  { %v254_v8 = vld [vmem:[%s565_s3] sm:$0x1]  ;;  %v428_v32 = vmov 920167782   ;;  %v429_v39 = vmov 1326507024  }
  0x18   :  { %v38_v2 = vcvt.s32.f32 %v35_v1  ;;  %s275_s1 = sshll.u32 %s430_s0, 4  ;;  %s431_s2 = smov [#allocation5]   ;;  %s276_s1 = int_to_ptr.vmem [resolvable:$true] %s275_s1 }
  0x19   :  { %s265_s3 = sshll.u32 %s431_s2, 4  ;;  %s432_s16 = smov [#allocation8]   ;;  %s510_s3 = int_to_ptr.vmem [resolvable:$true] %s265_s3 }
  0x1a   :  { %v40_v6 = vmul.f32 %v39_v3, %v38_v2  ;;  %v253_v7 = vmul.f32 %v252_v5, %v38_v2  ;;  %s285_s17 = sshll.u32 %s432_s16, 4  ;;  %s351_s18 = scalar_lea.vmem %s276_s1, 16  ;;  %s512_s17 = int_to_ptr.vmem [resolvable:$true] %s285_s17 }
  0x1b   :  { %p352_p8 = scmp.ne.s32.totalorder %s276_s1, %s351_s18  ;;  %s355_s19 = scalar_lea.vmem %s276_s1, 32 }
  0x1c   :  { %v489_v9 = vadd.f32 %v41_v4, %v40_v6  ;;  %v255_v10 = vadd.f32 %v254_v8, %v253_v7  ;;  %p356_p9 = scmp.lt.s32.totalorder %s276_s1, %s276_s1  ;;  %p357_p10 = scmp.lt.s32.totalorder %s355_s19, %s351_s18 }
  0x1e   :  { %v46_v11 = vand.u32 2139095040, %v489_v9  ;;  %v256_v12 = vmul.f32 1.442695, %v255_v10  ;;  %v43_v14 = vand.u32 2147483647, %v489_v9  ;;  %vm45_vm7 = vcmp.lt.s32.totalorder %v489_v9, 0  ;;  %p358_p11 = por %p357_p10, %p356_p9 }
  0x1f   :  { %vm135_vm15 = vweird.f32 %v489_v9 }
  0x20   :  { %v47_v13 = vshrl.u32 %v46_v11, 23  ;;  %323 = vpow2.f32 %v256_v12  ;;  %v50_v17 = vand.u32 8388607, %v43_v14  ;;  %vm44_vm8 = vcmp.le.f32.partialorder %v43_v14, 0.7853982  ;;  %p359_p12 = pnand %p358_p11, %p352_p8 }
  0x22   :  { %v301_v15 = vadd.s32 4294967169, %v47_v13  ;;  %v51_v20 = vor.u32 8388608, %v50_v17 }
  0x24   :  { %v53_v16 = vadd.s32 1, %v301_v15  ;;  %v91_v41 = vshll.u32 %v51_v20, 8 }
  0x26   :  { %vm54_vm0 = vcmp.gt.s32.totalorder %v53_v16, 0 }
  0x27   :  { %v55_v18 = vsel %vm54_vm0, %v53_v16, 0 }
  0x28   :  { %v57_v19 = vand.u32 31, %v55_v18  ;;  %v56_v21 = vshrl.u32 %v55_v18, 5 }
  0x2a   :  { %v58_v22 = vsub.s32 32, %v57_v19  ;;  %v60_v24 = vshll.u32 %v424_v23, %v57_v19  ;;  %v63_v26 = vshll.u32 %v425_v25, %v57_v19  ;;  %v66_v28 = vshll.u32 %v426_v27, %v57_v19  ;;  %v324_v29 = vpop.eup %323 }
  0x2b   :  { %v69_v31 = vshll.u32 %v427_v30, %v57_v19  ;;  %v72_v33 = vshll.u32 %v428_v32, %v57_v19  ;;  %258 = vst [vmem:[#allocation8] sm:$0x1] %v324_v29  ;;  %vm75_vm1 = vcmp.lt.s32.totalorder %v56_v21, 1  ;;  %vm78_vm2 = vcmp.lt.s32.totalorder %v56_v21, 4 }
  0x2c   :  { %v59_v34 = vshrl.u32 %v424_v23, %v58_v22  ;;  %v61_v35 = vshrl.u32 %v425_v25, %v58_v22  ;;  %v64_v36 = vshrl.u32 %v426_v27, %v58_v22  ;;  %v67_v37 = vshrl.u32 %v427_v30, %v58_v22 }
  0x2d   :  { %v70_v38 = vshrl.u32 %v428_v32, %v58_v22  ;;  %v73_v40 = vshrl.u32 %v429_v39, %v58_v22  ;;  %vm76_vm3 = vcmp.lt.s32.totalorder %v56_v21, 2  ;;  %vm77_vm4 = vcmp.lt.s32.totalorder %v56_v21, 3 }
  0x2e   :  { %v62_v42 = vor.u32 %v61_v35, %v60_v24  ;;  %v65_v43 = vor.u32 %v64_v36, %v63_v26  ;;  %v68_v44 = vor.u32 %v67_v37, %v66_v28 }
  0x2f   :  { %v71_v45 = vor.u32 %v70_v38, %v69_v31  ;;  %v74_v46 = vor.u32 %v73_v40, %v72_v33 }
  0x30   :  { %v79_v47 = vsel %vm75_vm1, %v59_v34, %v62_v42  ;;  %v80_v48 = vsel %vm78_vm2, %v68_v44, 2102212464  ;;  %v83_v49 = vsel %vm75_vm1, %v62_v42, %v65_v43  ;;  %v87_v50 = vsel %vm75_vm1, %v65_v43, %v68_v44 }
  0x31   :  { %v81_v51 = vsel %vm77_vm4, %v65_v43, %v80_v48  ;;  %v84_v52 = vsel %vm78_vm2, %v71_v45, 920167782  ;;  %v88_v53 = vsel %vm78_vm2, %v74_v46, 1326507024 }
  0x32   :  { %v85_v54 = vsel %vm77_vm4, %v68_v44, %v84_v52  ;;  %v89_v55 = vsel %vm77_vm4, %v71_v45, %v88_v53  ;;  %v82_v56 = vsel %vm76_vm3, %v79_v47, %v81_v51 }
  0x33   :  { %v86_v57 = vsel %vm76_vm3, %v83_v49, %v85_v54  ;;  %v90_v58 = vsel %vm76_vm3, %v87_v50, %v89_v55  ;;  %v98_v63 = vmul.u32 %v91_v41, %v82_v56 }
  0x34   :  { %v495_v59 = vmul.u32.u64.low %v91_v41, %v90_v58  ;;  %v496_v60 = vmul.u32.u64.high %v91_v41, %v90_v58, %v495_v59  ;;  %v498_v61 = vmul.u32.u64.low %v91_v41, %v86_v57  ;;  %v499_v62 = vmul.u32.u64.high %v91_v41, %v86_v57, %v498_v61 }
  0x36   :  { %vm100_vm5 = vc.u32 %v496_v60, %v498_v61  ;;  %v101_v0 = vadd.s32 1, %v499_v62  ;;  %v99_v12 = vadd.s32 %v498_v61, %v496_v60 }
  0x38   :  { %v102_v1 = vsel %vm100_vm5, %v101_v0, %v499_v62 }
  0x39   :  { %v103_v2 = vadd.s32 %v102_v1, %v98_v63 }
  0x3b   :  { %v104_v3 = vadd.s32 536870912, %v103_v2 }
  0x3d   :  { %v105_v4 = vshrl.u32 %v104_v3, 30 }
  0x3f   :  { %v106_v5 = vshll.u32 %v105_v4, 30  ;;  %v129_v25 = vsub.s32 4, %v105_v4 }
  0x41   :  { %v107_v6 = vsub.s32 %v103_v2, %v106_v5  ;;  %v130_v28 = vsel %vm45_vm7, %v129_v25, %v105_v4 }
  0x42   :  { %v132_v31 = vsel %vm44_vm8, 0, %v130_v28 }
  0x43   :  { %v109_v7 = vsub.s32 0, %v107_v6  ;;  %v136_v32 = vadd.s32 3, %v132_v31  ;;  %v241_v33 = vand.u32 3, %v132_v31 }
  0x45   :  { %v302_v8 = vmin.u32 %v109_v7, %v107_v6  ;;  %v137_v34 = vand.u32 3, %v136_v32  ;;  %vm246_vm9 = vcmp.eq.s32.totalorder %v241_v33, 2  ;;  %vm243_vm11 = vcmp.eq.s32.totalorder %v241_v33, 0 }
  0x46   :  { %vm242_vm13 = vcmp.lt.s32.totalorder %v241_v33, 2 }
  0x47   :  { %v111_v10 = vclz %v302_v8  ;;  %vm142_vm10 = vcmp.eq.s32.totalorder %v137_v34, 2  ;;  %vm139_vm12 = vcmp.eq.s32.totalorder %v137_v34, 0  ;;  %vm138_vm14 = vcmp.lt.s32.totalorder %v137_v34, 2 }
  0x49   :  { %v303_v11 = vadd.s32 4294967294, %v111_v10 }
  0x4b   :  { %vm304_vm6 = vcmp.lt.s32.totalorder %v303_v11, 0 }
  0x4c   :  { %v114_v13 = vsel %vm304_vm6, 0, %v303_v11 }
  0x4d   :  { %v115_v15 = vsub.s32 32, %v114_v13  ;;  %v116_v16 = vshll.u32 %v107_v6, %v114_v13  ;;  %v119_v17 = vsub.s32 4294967266, %v114_v13 }
  0x4f   :  { %v117_v18 = vshrl.u32 %v99_v12, %v115_v15  ;;  %v120_v19 = vadd.s32 127, %v119_v17 }
  0x51   :  { %v118_v20 = vor.u32 %v117_v18, %v116_v16  ;;  %v121_v21 = vshll.u32 %v120_v19, 23 }
  0x53   :  { %v122_v22 = vor.u32 4788187, %v121_v21  ;;  %v125_v23 = vcvt.s32.f32 %v118_v20 }
  0x55   :  { %v123_v24 = vand.u32 2147483647, %v122_v22 }
  0x57   :  { %v126_v26 = vmul.f32 %v125_v23, %v123_v24 }
  0x59   :  { %v127_v27 = vxor.u32 2147483648, %v126_v26 }
  0x5b   :  { %v128_v29 = vsel %vm45_vm7, %v127_v27, %v126_v26 }
  0x5c   :  { %v131_v30 = vsel %vm44_vm8, %v489_v9, %v128_v29 }
  0x5d   :  { %325 = vcosq.f32 %v131_v30 }
  0x5e   :  { %327 = vsinq.f32 %v131_v30 }
  0x67   :  { %v326_v35 = vpop.eup %325 }
  0x68   :  { %v328_v36 = vpop.eup %327  ;;  %v143_v37 = vxor.u32 2147483648, %v326_v35 }
  0x69   :  { %v140_v38 = vxor.u32 2147483648, %v328_v36 }
  0x6a   :  { %v248_v14 = vsel %vm246_vm9, %v143_v37, %v328_v36  ;;  %v144_v39 = vsel %vm142_vm10, %v143_v37, %v328_v36 }
  0x6b   :  { %v245_v40 = vsel %vm243_vm11, %v326_v35, %v140_v38  ;;  %v141_v41 = vsel %vm139_vm12, %v326_v35, %v140_v38 }
  0x6c   :  { %v249_v42 = vsel %vm242_vm13, %v245_v40, %v248_v14  ;;  %v145_v43 = vsel %vm138_vm14, %v141_v41, %v144_v39 }
  0x6d   :  { %v250_v44 = vsel %vm135_vm15, nan, %v249_v42  ;;  %v146_v45 = vsel %vm135_vm15, nan, %v145_v43 }
  0x6e   :  { %251 = vst [vmem:[#allocation6] sm:$0x1] %v250_v44  ;;  %147 = vst [vmem:[#allocation5] sm:$0x1] %v146_v45 }
  0x6f   :  { %362 = shalt.err (!%p359_p12)
}
  0x70   :  { %s363_s22 = scalar_lea.hbm %s567_s5, 16 }
  0x71   :  { %p364_p13 = scmp.ne.s32.totalorder %s567_s5, %s363_s22  ;;  %p367_p0 = scmp.lt.u32.totalorder %s363_s22, %s567_s5 }
  0x73   :  { %p369_p1 = pnand %p367_p0, %p364_p13 }
  0x75   :  { %372 = shalt.err (!%p369_p1)
}
  0x76   :  { %278 = dma.vmem_to_hbm [thread:$0]  %s276_s1, 16, %s567_s5, [#allocation7]  }
  0x77   :  { %s373_s29 = scalar_lea.vmem %s510_s3, 16  ;;  %s377_s30 = scalar_lea.vmem %s510_s3, 32 }
  0x78   :  { %p374_p2 = scmp.ne.s32.totalorder %s510_s3, %s373_s29  ;;  %p378_p3 = scmp.lt.s32.totalorder %s510_s3, %s510_s3 }
  0x79   :  { %p379_p4 = scmp.lt.s32.totalorder %s377_s30, %s373_s29 }
  0x7b   :  { %p380_p5 = por %p379_p4, %p378_p3 }
  0x7d   :  { %p381_p6 = pnand %p380_p5, %p374_p2 }
  0x7f   :  { %384 = shalt.err (!%p381_p6)
}
  0x80   :  { %s385_s9 = scalar_lea.hbm %s566_s4, 16 }
  0x81   :  { %p386_p7 = scmp.ne.s32.totalorder %s566_s4, %s385_s9  ;;  %p389_p8 = scmp.lt.u32.totalorder %s385_s9, %s566_s4 }
  0x83   :  { %p391_p9 = pnand %p389_p8, %p386_p7 }
  0x85   :  { %394 = shalt.err (!%p391_p9)
}
  0x86   :  { %268 = dma.vmem_to_hbm [thread:$0]  %s510_s3, 16, %s566_s4, [#allocation4]  }
  0x87   :  { %s395_s15 = scalar_lea.vmem %s512_s17, 16  ;;  %s399_s0 = scalar_lea.vmem %s512_s17, 32 }
  0x88   :  { %p396_p10 = scmp.ne.s32.totalorder %s512_s17, %s395_s15  ;;  %p400_p11 = scmp.lt.s32.totalorder %s512_s17, %s512_s17 }
  0x89   :  { %p401_p12 = scmp.lt.s32.totalorder %s399_s0, %s395_s15 }
  0x8b   :  { %p402_p13 = por %p401_p12, %p400_p11 }
  0x8d   :  { %p403_p0 = pnand %p402_p13, %p396_p10 }
  0x8f   :  { %406 = shalt.err (!%p403_p0)
}
  0x90   :  { %s407_s16 = scalar_lea.hbm %s568_s6, 16 }
  0x91   :  { %p408_p1 = scmp.ne.s32.totalorder %s568_s6, %s407_s16  ;;  %p411_p2 = scmp.lt.u32.totalorder %s407_s16, %s568_s6 }
  0x93   :  { %p413_p3 = pnand %p411_p2, %p408_p1 }
  0x95   :  { %416 = shalt.err (!%p413_p3)
}
  0x96   :  { %288 = dma.vmem_to_hbm [thread:$0]  %s512_s17, 16, %s568_s6, [#allocation7]  }
  0x97   :  { %419 = dma.done.wait [#allocation4], 16  }
  0x98   :  { %420 = vsyncadd [#allocation4], 4294967280 }
  0x99   :  { %421 = dma.done.wait [#allocation7], 32  }
  0x9a   :  { %422 = vsyncadd [#allocation7], 4294967264 }
  0x9b   :  { %298 = vsyncpa [#allocation3], 1 }
  0x9c   :  { %299 = vsyncpa [#allocation4], 1 }
  0x9d   :  { %300 = vsyncpa [#allocation7], 1 }

</bundles_post_ra>
